<compile_context>
chip_gen: v7x
topology: tpu7x:2x2x1
jax: 0.10.0
libtpu: 0.0.40
codegen_flags: <defaults>
</compile_context>

<pallas_src>
import jax
import jax.numpy as jnp
from jax.experimental import pallas as pl
from jax.experimental.pallas import tpu as pltpu

SUBLANE = 8  # TPU sublane count (second-to-last dim granularity)


def _affine_kernel(x_ref, w_ref, b_ref, o_ref):
    # Collapsed Net3 forward: o = x @ W_eff + b_eff.
    # K == 2 -> two VPU broadcast-FMAs instead of an MXU pass (mem-bound kernel,
    # compute slots are idle either way; avoids per-tile MXU push/pop latency).
    x = x_ref[...]                                   # (tb, 2)
    w = w_ref[...]                                   # (2, out_dim)
    acc = x[:, 0:1] * w[0:1, :] + x[:, 1:2] * w[1:2, :] + b_ref[...]
    o_ref[...] = acc.astype(o_ref.dtype)


def _collapse_params(params):
    """Fold the activation-free Linear chain into one affine (W_eff, b_eff)."""
    w_eff, b_eff = params[0]
    for w, b in params[1:]:
        b_eff = b_eff @ w + b
        w_eff = w_eff @ w
    return w_eff, b_eff


def _round_up(n, m):
    return ((n + m - 1) // m) * m


def make_net3_forward(params, *, tile_b=2048):
    """Build a jitted forward(x) for Net3.

    params: list of (W, b) with W: (in, out), b: (1, out).
    tile_b: batch tile for the grid path (must be a multiple of 8).
    """
    assert tile_b % SUBLANE == 0, "tile_b must be a multiple of 8 (sublane)"

    # --- One-time algebraic collapse (valid: Net3.forward has no nonlinearity) ---
    w_eff, b_eff = _collapse_params(params)          # (2, out_dim), (1, out_dim)
    in_dim, out_dim = w_eff.shape

    def forward(x):
        batch = x.shape[0]
        b_pad = _round_up(batch, SUBLANE)
        if b_pad != batch:
            x_p = jnp.zeros((b_pad, in_dim), x.dtype).at[:batch].set(x)
        else:
            x_p = x

        flops = 2 * b_pad * in_dim * out_dim
        bytes_accessed = 4 * (b_pad * in_dim + w_eff.size + b_eff.size
                              + b_pad * out_dim)
        cost = pl.CostEstimate(flops=flops, transcendentals=0,
                               bytes_accessed=bytes_accessed)

        if batch <= tile_b:
            # Small batch: single invocation, no grid, everything VMEM-resident.
            out_p = pl.pallas_call(
                _affine_kernel,
                out_shape=jax.ShapeDtypeStruct((b_pad, out_dim), jnp.float32),
                in_specs=[
                    pl.BlockSpec(memory_space=pltpu.MemorySpace.VMEM),
                    pl.BlockSpec(memory_space=pltpu.MemorySpace.VMEM),
                    pl.BlockSpec(memory_space=pltpu.MemorySpace.VMEM),
                ],
                out_specs=pl.BlockSpec(memory_space=pltpu.MemorySpace.VMEM),
                cost_estimate=cost,
            )(x_p, w_eff, b_eff)
        else:
            # Large batch: 1-D parallel grid over batch tiles (shards across
            # TensorCores on v7x); weight/bias stay resident via constant
            # index_map.  Partial last tile handled by cdiv grid + masking.
            grid = (pl.cdiv(b_pad, tile_b),)
            out_p = pl.pallas_call(
                _affine_kernel,
                out_shape=jax.ShapeDtypeStruct((b_pad, out_dim), jnp.float32),
                grid=grid,
                in_specs=[
                    pl.BlockSpec((tile_b, in_dim), lambda i: (i, 0)),
                    pl.BlockSpec((in_dim, out_dim), lambda i: (0, 0)),
                    pl.BlockSpec((1, out_dim), lambda i: (0, 0)),
                ],
                out_specs=pl.BlockSpec((tile_b, out_dim), lambda i: (i, 0)),
                compiler_params=pltpu.CompilerParams(
                    dimension_semantics=("parallel",)),
                cost_estimate=cost,
            )(x_p, w_eff, b_eff)

        return out_p if b_pad == batch else out_p[:batch]

    return jax.jit(forward)


def init_params(key, out_put):
    """Deterministic init mimicking nn.Linear default (uniform +/- 1/sqrt(fan_in))."""
    dims = [(2, 32), (32, 64), (64, 32), (32, 16), (16, out_put)]   # Net3 layer dims
    params = []
    for (fan_in, fan_out) in dims:
        key, kw, kb = jax.random.split(key, 3)
        bound = 1.0 / jnp.sqrt(fan_in)
        w = jax.random.uniform(kw, (fan_in, fan_out), jnp.float32, -bound, bound)
        b = jax.random.uniform(kb, (1, fan_out), jnp.float32, -bound, bound)
        params.append((w, b))
    return params


def reference_forward(x, params):
    """Layer-by-layer reference, exactly mirroring Net3.forward."""
    h = x
    for w, b in params:
        h = h @ w + b
    return h


if __name__ == "__main__":
    key = jax.random.PRNGKey(0)
    kx, kp = jax.random.split(key)

    out_put = 4
    params = init_params(kp, out_put)

    fwd = make_net3_forward(params, tile_b=2048)

    # Small-batch (no-grid, VMEM-resident) path.
    batch = 8
    x = jax.random.normal(kx, (batch, 2), jnp.float32)
    out = jax.block_until_ready(fwd(x))
    ref = reference_forward(x, params)
    assert out.shape == (batch, out_put)
    assert jnp.allclose(out, ref, atol=1e-4, rtol=1e-4)

    # Larger batch: tiled "parallel" grid path; 5001 rows exercises both the
    # sublane row-pad (to 5008) and the partial last tile (cdiv grid of 3).
    batch_big = 5001
    xb = jax.random.normal(jax.random.PRNGKey(1), (batch_big, 2), jnp.float32)
    out_big = jax.block_until_ready(fwd(xb))
    ref_big = reference_forward(xb, params)
    assert out_big.shape == (batch_big, out_put)
    assert jnp.allclose(out_big, ref_big, atol=1e-4, rtol=1e-4)

    print("KERNEL_OK")
</pallas_src>

<mosaic_0001>
module attributes {stable_mosaic.version = 11 : i64} {
  func.func @_affine_kernel(%arg0: memref<8x2xf32, #tpu.memory_space<vmem>>, %arg1: memref<2x4xf32, #tpu.memory_space<vmem>>, %arg2: memref<1x4xf32, #tpu.memory_space<vmem>>, %arg3: memref<8x4xf32, #tpu.memory_space<vmem>>) attributes {dimension_semantics = [], scalar_prefetch = 0 : i64, scratch_operands = 0 : i64, tpu.core_type = #tpu.core_type<tc>} {
    %c0 = arith.constant 0 : index
    %c0_0 = arith.constant 0 : index
    %0 = vector.load %arg0[%c0, %c0_0] : memref<8x2xf32, #tpu.memory_space<vmem>>, vector<8x2xf32>
    %c0_1 = arith.constant 0 : index
    %c0_2 = arith.constant 0 : index
    %1 = vector.load %arg1[%c0_1, %c0_2] : memref<2x4xf32, #tpu.memory_space<vmem>>, vector<2x4xf32>
    %2 = vector.extract_strided_slice %0 {offsets = [0, 0], sizes = [8, 1], strides = [1, 1]} : vector<8x2xf32> to vector<8x1xf32>
    %3 = vector.extract_strided_slice %1 {offsets = [0, 0], sizes = [1, 4], strides = [1, 1]} : vector<2x4xf32> to vector<1x4xf32>
    %4 = vector.broadcast %2 : vector<8x1xf32> to vector<8x4xf32>
    %5 = vector.broadcast %3 : vector<1x4xf32> to vector<8x4xf32>
    %6 = arith.mulf %4, %5 : vector<8x4xf32>
    %7 = vector.extract_strided_slice %0 {offsets = [0, 1], sizes = [8, 1], strides = [1, 1]} : vector<8x2xf32> to vector<8x1xf32>
    %8 = vector.extract_strided_slice %1 {offsets = [1, 0], sizes = [1, 4], strides = [1, 1]} : vector<2x4xf32> to vector<1x4xf32>
    %9 = vector.broadcast %7 : vector<8x1xf32> to vector<8x4xf32>
    %10 = vector.broadcast %8 : vector<1x4xf32> to vector<8x4xf32>
    %11 = arith.mulf %9, %10 : vector<8x4xf32>
    %12 = arith.addf %6, %11 : vector<8x4xf32>
    %c0_3 = arith.constant 0 : index
    %c0_4 = arith.constant 0 : index
    %13 = vector.load %arg2[%c0_3, %c0_4] : memref<1x4xf32, #tpu.memory_space<vmem>>, vector<1x4xf32>
    %14 = vector.broadcast %13 : vector<1x4xf32> to vector<8x4xf32>
    %15 = arith.addf %12, %14 : vector<8x4xf32>
    %c0_5 = arith.constant 0 : index
    %c0_6 = arith.constant 0 : index
    %16 = vector.load %arg3[%c0_5, %c0_6] : memref<8x4xf32, #tpu.memory_space<vmem>>, vector<8x4xf32>
    tpu.vector_store %arg3[%c0_5, %c0_6], %15 {strides = array<i32>} : memref<8x4xf32, #tpu.memory_space<vmem>>, vector<8x4xf32>,
    return
  }
}

</mosaic_0001>

<bundles_post_ra>
// kernel: forward.1
= control target key start
LH: loop header
LB: loop body
LE: loop exit
PB: predicated region body
PF: predicated region fallthrough
CT: control target
= control target key end

     0   :  { %v55_v0 = vmov 0   ;;  %v56_v2 = vmov 1   ;;  %v21_v3 = vlaneseq  ;;  %vm44_vm0 = vcmask 31744   ;;  %s89_s0 = inlined_call_operand.vmem [shape: f32[8,2], index: 0, kind: input, shape index: {}]   ;;  %s90_s1 = inlined_call_operand.vmem [shape: f32[2,4], index: 1, kind: input, shape index: {}]   ;;  %s91_s2 = inlined_call_operand.vmem [shape: f32[1,4], index: 2, kind: input, shape index: {}]   ;;  %s92_s3 = inlined_call_operand.vmem [shape: f32[8,4], index: 3, kind: output, shape index: {}]  }
   0x1   :  { %53 = vset.pattern.permute.xlu0 %v55_v0  ;;  %v14_v1 = vld [vmem:[%s89_s0] sm:$0xff] }
   0x2   :  { %18 = vperm.xlu0 %53, %v14_v1   ;;  %v22_v4 = vshrl.u32 %v21_v3, 7  ;;  %v15_v7 = vld [vmem:[%s90_s1] sm:$0x3] }
   0x3   :  { %v50_v14 = vld [vmem:[%s91_s2] ss:$0 sm:$0xff] }
   0x4   :  { %v23_v5 = vsub.s32 0, %v22_v4  ;;  %v32_v6 = vsub.s32 1, %v22_v4 }
   0x6   :  { %54 = vset.pattern.permute.xlu0 %v56_v2  ;;  %v24_v9 = vrot.slane %v15_v7, %v23_v5  ;;  %v33_v10 = vrot.slane %v15_v7, %v32_v6 }
   0x7   :  { %27 = vperm.xlu0 %54, %v14_v1  }
  0x81   :  { %v19_v8 = vpop.permute.xlu0 %18 }
  0x82   :  { %v25_v12 = vmul.f32 %v24_v9, %v19_v8 }
  0x86   :  { %v28_v11 = vpop.permute.xlu0 %27 }
  0x87   :  { %v34_v13 = vmul.f32 %v33_v10, %v28_v11 }
  0x89   :  { %v35_v15 = vadd.f32 %v34_v13, %v25_v12 }
  0x8b   :  { %v43_v16 = vadd.f32 %v50_v14, %v35_v15 }
  0x8d   :  { %45 = vst.msk [vmem:[%s92_s3] sm:$0xff] %vm44_vm0, %v43_v16 }

</bundles_post_ra>
